<compile_context>
chip_gen: v7x
topology: tpu7x:2x2x1
jax: 0.10.0
libtpu: 0.0.40
codegen_flags: <defaults>
</compile_context>

<pallas_src>
import jax
import jax.numpy as jnp
from jax.experimental import pallas as pl
from jax.experimental.pallas import tpu as pltpu


# ---------------------------------------------------------------------------
# Kernel
# ---------------------------------------------------------------------------
def _make_reducenet_kernel(alpha: float):
    def kernel(x_ref,
               w2_ref, b2_ref,
               w3_ref, b3_ref,
               w4_ref, b4_ref,
               w5_ref, b5_ref,
               w6_ref, b6_ref,
               o_ref):
        def linear(h, w_ref, b_ref):
            # bf16 operands into the MXU, f32 accumulation, f32 bias add.
            return jnp.dot(h.astype(jnp.bfloat16), w_ref[...],
                           preferred_element_type=jnp.float32) + b_ref[...]

        def leaky_relu(h):
            # identical to where(h > 0, h, alpha * h) for 0 < alpha < 1
            return jnp.maximum(h, alpha * h)

        h = x_ref[...]                                # (TB, 22)   f32
        h = leaky_relu(linear(h, w2_ref, b2_ref))     # (TB, 1024) 22   -> 1000(+pad)
        h = leaky_relu(linear(h, w3_ref, b3_ref))     # (TB, 128)  1000 -> 100(+pad)
        h = leaky_relu(linear(h, w4_ref, b4_ref))     # (TB, 128)  100  -> 50(+pad)
        h = leaky_relu(linear(h, w5_ref, b5_ref))     # (TB, 128)  50   -> 10(+pad)
        # 10 -> 1 as VPU multiply + lane reduction (w6 stored as a (1, 128) row).
        out = jnp.sum(h * w6_ref[...].astype(jnp.float32),
                      axis=-1, keepdims=True) + b6_ref[...]
        o_ref[...] = out.astype(o_ref.dtype)          # (TB, 1)

    return kernel


# ---------------------------------------------------------------------------
# Wrapper
# ---------------------------------------------------------------------------
def _round_up(n, m):
    return ((n + m - 1) // m) * m


def reducenet_forward(x, prepped, alpha: float, tb: int = 2048):
    """x: (B, 22) float32. prepped: padded/bf16 params from prepare_params()."""
    B, F = x.shape
    assert F == 22

    # Tile size: multiple of 8 sublanes, no bigger than the (padded) batch.
    tb = min(tb, _round_up(B, 8))
    b_pad = _round_up(B, tb)
    if b_pad != B:
        x = jnp.pad(x, ((0, b_pad - B), (0, 0)))      # zero rows, sliced off below
    grid = (pl.cdiv(b_pad, tb),)

    weight_args = (
        prepped["w2"], prepped["b2"],
        prepped["w3"], prepped["b3"],
        prepped["w4"], prepped["b4"],
        prepped["w5"], prepped["b5"],
        prepped["w6"], prepped["b6"],
    )

    def resident_spec(a):
        # full-array block, constant index -> DMA'd once, resident across tiles
        return pl.BlockSpec(a.shape, lambda i: (0,) * a.ndim)

    in_specs = [pl.BlockSpec((tb, 22), lambda i: (i, 0))] + [
        resident_spec(a) for a in weight_args
    ]
    out_spec = pl.BlockSpec((tb, 1), lambda i: (i, 0))

    out = pl.pallas_call(
        _make_reducenet_kernel(alpha),
        out_shape=jax.ShapeDtypeStruct((b_pad, 1), jnp.float32),
        grid=grid,
        in_specs=in_specs,
        out_specs=out_spec,
        compiler_params=pltpu.CompilerParams(
            dimension_semantics=("parallel",)),   # uses both TCs on v7x
    )(x, *weight_args)
    return out[:B]


# ---------------------------------------------------------------------------
# Parameters
# ---------------------------------------------------------------------------
def init_params(key):
    """Deterministic init matching nn.Linear shapes (stored transposed: (in, out))."""
    dims = [22, 1000, 100, 50, 10, 1]
    names = ["2", "3", "4", "5", "6"]
    params = {}
    for i, name in enumerate(names):
        fan_in, fan_out = dims[i], dims[i + 1]
        key, kw, kb = jax.random.split(key, 3)
        bound = 1.0 / jnp.sqrt(fan_in)
        params["w" + name] = jax.random.uniform(
            kw, (fan_in, fan_out), jnp.float32, -bound, bound)
        params["b" + name] = jax.random.uniform(
            kb, (1, fan_out), jnp.float32, -bound, bound)
    return params


def prepare_params(params):
    """Zero-pad hidden widths to lane multiples and cast weights to bf16.

    Padding is numerically inert: padded weight rows/cols and bias lanes are
    zero, and leaky_relu(0) == 0, so padded lanes carry exact zeros through
    every layer. Biases stay f32 (added after f32 accumulation).
    """
    def pad_to(a, shape):
        return jnp.pad(a, [(0, s - d) for d, s in zip(a.shape, shape)])

    p = {}
    p["w2"] = pad_to(params["w2"], (22, 1024)).astype(jnp.bfloat16)
    p["b2"] = pad_to(params["b2"], (1, 1024))
    p["w3"] = pad_to(params["w3"], (1024, 128)).astype(jnp.bfloat16)
    p["b3"] = pad_to(params["b3"], (1, 128))
    p["w4"] = pad_to(params["w4"], (128, 128)).astype(jnp.bfloat16)
    p["b4"] = pad_to(params["b4"], (1, 128))
    p["w5"] = pad_to(params["w5"], (128, 128)).astype(jnp.bfloat16)
    p["b5"] = pad_to(params["b5"], (1, 128))
    # Last layer (10 -> 1) is done as a lane reduction: store w6 as a row.
    p["w6"] = pad_to(params["w6"].T, (1, 128)).astype(jnp.bfloat16)   # (1, 128)
    p["b6"] = params["b6"]                                            # (1, 1)
    return p


# ---------------------------------------------------------------------------
# Pure-JAX reference (mirrors the kernel's bf16/padding choices exactly)
# ---------------------------------------------------------------------------
def reducenet_reference(x, prepped, alpha):
    def lrelu(h):
        return jnp.maximum(h, alpha * h)

    def lin(h, w, b):
        return jnp.dot(h.astype(jnp.bfloat16), w,
                       preferred_element_type=jnp.float32) + b

    h = lrelu(lin(x, prepped["w2"], prepped["b2"]))
    h = lrelu(lin(h, prepped["w3"], prepped["b3"]))
    h = lrelu(lin(h, prepped["w4"], prepped["b4"]))
    h = lrelu(lin(h, prepped["w5"], prepped["b5"]))
    return jnp.sum(h * prepped["w6"].astype(jnp.float32),
                   axis=-1, keepdims=True) + prepped["b6"]


# ---------------------------------------------------------------------------
if __name__ == "__main__":
    alpha = 0.01
    key = jax.random.PRNGKey(0)
    params = init_params(key)
    prepped = prepare_params(params)

    # 1) single-tile path
    key, kx = jax.random.split(key)
    x = jax.random.normal(kx, (8, 22), dtype=jnp.float32)
    out = jax.block_until_ready(reducenet_forward(x, prepped, alpha))
    ref = reducenet_reference(x, prepped, alpha)
    assert out.shape == (8, 1)
    assert jnp.allclose(out, ref, atol=1e-3, rtol=1e-3), "mismatch (single tile)"

    # 2) multi-tile path (3 grid steps, resident weights reused across tiles)
    key, kx = jax.random.split(key)
    x = jax.random.normal(kx, (24, 22), dtype=jnp.float32)
    out = jax.block_until_ready(reducenet_forward(x, prepped, alpha, tb=8))
    ref = reducenet_reference(x, prepped, alpha)
    assert out.shape == (24, 1)
    assert jnp.allclose(out, ref, atol=1e-3, rtol=1e-3), "mismatch (multi tile)"

    # 3) padded-batch path (B not a multiple of the tile)
    key, kx = jax.random.split(key)
    x = jax.random.normal(kx, (5, 22), dtype=jnp.float32)
    out = jax.block_until_ready(reducenet_forward(x, prepped, alpha, tb=8))
    ref = reducenet_reference(x, prepped, alpha)
    assert out.shape == (5, 1)
    assert jnp.allclose(out, ref, atol=1e-3, rtol=1e-3), "mismatch (padded batch)"

    print("KERNEL_OK")
</pallas_src>

<mosaic_0001>
module attributes {stable_mosaic.version = 11 : i64} {
  func.func @kernel(%arg0: i32, %arg1: memref<8x22xf32, #tpu.memory_space<vmem>>, %arg2: memref<22x1024xbf16, #tpu.memory_space<vmem>>, %arg3: memref<1x1024xf32, #tpu.memory_space<vmem>>, %arg4: memref<1024x128xbf16, #tpu.memory_space<vmem>>, %arg5: memref<1x128xf32, #tpu.memory_space<vmem>>, %arg6: memref<128x128xbf16, #tpu.memory_space<vmem>>, %arg7: memref<1x128xf32, #tpu.memory_space<vmem>>, %arg8: memref<128x128xbf16, #tpu.memory_space<vmem>>, %arg9: memref<1x128xf32, #tpu.memory_space<vmem>>, %arg10: memref<1x128xbf16, #tpu.memory_space<vmem>>, %arg11: memref<1x1xf32, #tpu.memory_space<vmem>>, %arg12: memref<8x1xf32, #tpu.memory_space<vmem>>) attributes {dimension_semantics = [#tpu.dimension_semantics<parallel>], iteration_bounds = array<i64: 1>, scalar_prefetch = 0 : i64, scratch_operands = 0 : i64, tpu.core_type = #tpu.core_type<tc>, window_params = [{transform_indices = @transform_0, window_bounds = array<i64: 8, 22>}, {pipeline_mode = #tpu.pipeline_mode<synchronous>, transform_indices = @transform_1, window_bounds = array<i64: 22, 1024>}, {pipeline_mode = #tpu.pipeline_mode<synchronous>, transform_indices = @transform_2, window_bounds = array<i64: 1, 1024>}, {pipeline_mode = #tpu.pipeline_mode<synchronous>, transform_indices = @transform_3, window_bounds = array<i64: 1024, 128>}, {pipeline_mode = #tpu.pipeline_mode<synchronous>, transform_indices = @transform_4, window_bounds = array<i64: 1, 128>}, {pipeline_mode = #tpu.pipeline_mode<synchronous>, transform_indices = @transform_5, window_bounds = array<i64: 128, 128>}, {pipeline_mode = #tpu.pipeline_mode<synchronous>, transform_indices = @transform_6, window_bounds = array<i64: 1, 128>}, {pipeline_mode = #tpu.pipeline_mode<synchronous>, transform_indices = @transform_7, window_bounds = array<i64: 128, 128>}, {pipeline_mode = #tpu.pipeline_mode<synchronous>, transform_indices = @transform_8, window_bounds = array<i64: 1, 128>}, {pipeline_mode = #tpu.pipeline_mode<synchronous>, transform_indices = @transform_9, window_bounds = array<i64: 1, 128>}, {pipeline_mode = #tpu.pipeline_mode<synchronous>, transform_indices = @transform_10, window_bounds = array<i64: 1, 1>}, {transform_indices = @transform_11, window_bounds = array<i64: 8, 1>}]} {
    %c0 = arith.constant 0 : index
    %c0_0 = arith.constant 0 : index
    %0 = vector.load %arg1[%c0, %c0_0] : memref<8x22xf32, #tpu.memory_space<vmem>>, vector<8x22xf32>
    %1 = arith.truncf %0 : vector<8x22xf32> to vector<8x22xbf16>
    %c0_1 = arith.constant 0 : index
    %c0_2 = arith.constant 0 : index
    %2 = vector.load %arg2[%c0_1, %c0_2] : memref<22x1024xbf16, #tpu.memory_space<vmem>>, vector<22x1024xbf16>
    %cst = arith.constant dense<0.000000e+00> : vector<8x1024xf32>
    %3 = tpu.matmul %1, %2, %cst {dimension_numbers = #tpu.dot_dimension_numbers<[1], [0], [0], [1], [0, 0, 1, 1], [], []>} : vector<8x22xbf16>, vector<22x1024xbf16>, vector<8x1024xf32> -> vector<8x1024xf32>
    %c0_3 = arith.constant 0 : index
    %c0_4 = arith.constant 0 : index
    %4 = vector.load %arg3[%c0_3, %c0_4] : memref<1x1024xf32, #tpu.memory_space<vmem>>, vector<1x1024xf32>
    %5 = vector.broadcast %4 : vector<1x1024xf32> to vector<8x1024xf32>
    %6 = arith.addf %3, %5 : vector<8x1024xf32>
    %cst_5 = arith.constant 0.00999999977 : f32
    %7 = vector.broadcast %cst_5 : f32 to vector<8x1024xf32>
    %8 = arith.mulf %7, %6 : vector<8x1024xf32>
    %9 = arith.maximumf %6, %8 : vector<8x1024xf32>
    %10 = arith.truncf %9 : vector<8x1024xf32> to vector<8x1024xbf16>
    %c0_6 = arith.constant 0 : index
    %c0_7 = arith.constant 0 : index
    %11 = vector.load %arg4[%c0_6, %c0_7] : memref<1024x128xbf16, #tpu.memory_space<vmem>>, vector<1024x128xbf16>
    %cst_8 = arith.constant dense<0.000000e+00> : vector<8x128xf32>
    %12 = tpu.matmul %10, %11, %cst_8 {dimension_numbers = #tpu.dot_dimension_numbers<[1], [0], [0], [1], [0, 0, 1, 1], [], []>} : vector<8x1024xbf16>, vector<1024x128xbf16>, vector<8x128xf32> -> vector<8x128xf32>
    %c0_9 = arith.constant 0 : index
    %c0_10 = arith.constant 0 : index
    %13 = vector.load %arg5[%c0_9, %c0_10] : memref<1x128xf32, #tpu.memory_space<vmem>>, vector<1x128xf32>
    %14 = vector.broadcast %13 : vector<1x128xf32> to vector<8x128xf32>
    %15 = arith.addf %12, %14 : vector<8x128xf32>
    %cst_11 = arith.constant 0.00999999977 : f32
    %16 = vector.broadcast %cst_11 : f32 to vector<8x128xf32>
    %17 = arith.mulf %16, %15 : vector<8x128xf32>
    %18 = arith.maximumf %15, %17 : vector<8x128xf32>
    %19 = arith.truncf %18 : vector<8x128xf32> to vector<8x128xbf16>
    %c0_12 = arith.constant 0 : index
    %c0_13 = arith.constant 0 : index
    %20 = vector.load %arg6[%c0_12, %c0_13] : memref<128x128xbf16, #tpu.memory_space<vmem>>, vector<128x128xbf16>
    %cst_14 = arith.constant dense<0.000000e+00> : vector<8x128xf32>
    %21 = tpu.matmul %19, %20, %cst_14 {dimension_numbers = #tpu.dot_dimension_numbers<[1], [0], [0], [1], [0, 0, 1, 1], [], []>} : vector<8x128xbf16>, vector<128x128xbf16>, vector<8x128xf32> -> vector<8x128xf32>
    %c0_15 = arith.constant 0 : index
    %c0_16 = arith.constant 0 : index
    %22 = vector.load %arg7[%c0_15, %c0_16] : memref<1x128xf32, #tpu.memory_space<vmem>>, vector<1x128xf32>
    %23 = vector.broadcast %22 : vector<1x128xf32> to vector<8x128xf32>
    %24 = arith.addf %21, %23 : vector<8x128xf32>
    %cst_17 = arith.constant 0.00999999977 : f32
    %25 = vector.broadcast %cst_17 : f32 to vector<8x128xf32>
    %26 = arith.mulf %25, %24 : vector<8x128xf32>
    %27 = arith.maximumf %24, %26 : vector<8x128xf32>
    %28 = arith.truncf %27 : vector<8x128xf32> to vector<8x128xbf16>
    %c0_18 = arith.constant 0 : index
    %c0_19 = arith.constant 0 : index
    %29 = vector.load %arg8[%c0_18, %c0_19] : memref<128x128xbf16, #tpu.memory_space<vmem>>, vector<128x128xbf16>
    %cst_20 = arith.constant dense<0.000000e+00> : vector<8x128xf32>
    %30 = tpu.matmul %28, %29, %cst_20 {dimension_numbers = #tpu.dot_dimension_numbers<[1], [0], [0], [1], [0, 0, 1, 1], [], []>} : vector<8x128xbf16>, vector<128x128xbf16>, vector<8x128xf32> -> vector<8x128xf32>
    %c0_21 = arith.constant 0 : index
    %c0_22 = arith.constant 0 : index
    %31 = vector.load %arg9[%c0_21, %c0_22] : memref<1x128xf32, #tpu.memory_space<vmem>>, vector<1x128xf32>
    %32 = vector.broadcast %31 : vector<1x128xf32> to vector<8x128xf32>
    %33 = arith.addf %30, %32 : vector<8x128xf32>
    %cst_23 = arith.constant 0.00999999977 : f32
    %34 = vector.broadcast %cst_23 : f32 to vector<8x128xf32>
    %35 = arith.mulf %34, %33 : vector<8x128xf32>
    %36 = arith.maximumf %33, %35 : vector<8x128xf32>
    %c0_24 = arith.constant 0 : index
    %c0_25 = arith.constant 0 : index
    %37 = vector.load %arg10[%c0_24, %c0_25] : memref<1x128xbf16, #tpu.memory_space<vmem>>, vector<1x128xbf16>
    %38 = arith.extf %37 : vector<1x128xbf16> to vector<1x128xf32>
    %39 = vector.broadcast %38 : vector<1x128xf32> to vector<8x128xf32>
    %40 = arith.mulf %36, %39 : vector<8x128xf32>
    %cst_26 = arith.constant dense<0.000000e+00> : vector<8xf32>
    %41 = vector.multi_reduction <add>, %40, %cst_26 [1] : vector<8x128xf32> to vector<8xf32>
    %42 = vector.shape_cast %41 : vector<8xf32> to vector<8x1xf32>
    %c0_27 = arith.constant 0 : index
    %c0_28 = arith.constant 0 : index
    %43 = vector.load %arg11[%c0_27, %c0_28] : memref<1x1xf32, #tpu.memory_space<vmem>>, vector<1x1xf32>
    %44 = vector.broadcast %43 : vector<1x1xf32> to vector<8x1xf32>
    %45 = arith.addf %42, %44 : vector<8x1xf32>
    %c0_29 = arith.constant 0 : index
    %c0_30 = arith.constant 0 : index
    %46 = vector.load %arg12[%c0_29, %c0_30] : memref<8x1xf32, #tpu.memory_space<vmem>>, vector<8x1xf32>
    tpu.vector_store %arg12[%c0_29, %c0_30], %45 {strides = array<i32>} : memref<8x1xf32, #tpu.memory_space<vmem>>, vector<8x1xf32>,
    return
  }
  func.func @transform_0(%arg0: i32) -> (i32, i32) {
    %c0_i32 = arith.constant 0 : i32
    %c0_i32_0 = arith.constant 0 : i32
    return %arg0, %c0_i32 : i32, i32
  }
  func.func @transform_1(%arg0: i32) -> (i32, i32) {
    %c0_i32 = arith.constant 0 : i32
    %c0_i32_0 = arith.constant 0 : i32
    %c0_i32_1 = arith.constant 0 : i32
    return %c0_i32, %c0_i32_0 : i32, i32
  }
  func.func @transform_2(%arg0: i32) -> (i32, i32) {
    %c0_i32 = arith.constant 0 : i32
    %c0_i32_0 = arith.constant 0 : i32
    %c0_i32_1 = arith.constant 0 : i32
    return %c0_i32, %c0_i32_0 : i32, i32
  }
  func.func @transform_3(%arg0: i32) -> (i32, i32) {
    %c0_i32 = arith.constant 0 : i32
    %c0_i32_0 = arith.constant 0 : i32
    %c0_i32_1 = arith.constant 0 : i32
    return %c0_i32, %c0_i32_0 : i32, i32
  }
  func.func @transform_4(%arg0: i32) -> (i32, i32) {
    %c0_i32 = arith.constant 0 : i32
    %c0_i32_0 = arith.constant 0 : i32
    %c0_i32_1 = arith.constant 0 : i32
    return %c0_i32, %c0_i32_0 : i32, i32
  }
  func.func @transform_5(%arg0: i32) -> (i32, i32) {
    %c0_i32 = arith.constant 0 : i32
    %c0_i32_0 = arith.constant 0 : i32
    %c0_i32_1 = arith.constant 0 : i32
    return %c0_i32, %c0_i32_0 : i32, i32
  }
  func.func @transform_6(%arg0: i32) -> (i32, i32) {
    %c0_i32 = arith.constant 0 : i32
    %c0_i32_0 = arith.constant 0 : i32
    %c0_i32_1 = arith.constant 0 : i32
    return %c0_i32, %c0_i32_0 : i32, i32
  }
  func.func @transform_7(%arg0: i32) -> (i32, i32) {
    %c0_i32 = arith.constant 0 : i32
    %c0_i32_0 = arith.constant 0 : i32
    %c0_i32_1 = arith.constant 0 : i32
    return %c0_i32, %c0_i32_0 : i32, i32
  }
  func.func @transform_8(%arg0: i32) -> (i32, i32) {
    %c0_i32 = arith.constant 0 : i32
    %c0_i32_0 = arith.constant 0 : i32
    %c0_i32_1 = arith.constant 0 : i32
    return %c0_i32, %c0_i32_0 : i32, i32
  }
  func.func @transform_9(%arg0: i32) -> (i32, i32) {
    %c0_i32 = arith.constant 0 : i32
    %c0_i32_0 = arith.constant 0 : i32
    %c0_i32_1 = arith.constant 0 : i32
    return %c0_i32, %c0_i32_0 : i32, i32
  }
  func.func @transform_10(%arg0: i32) -> (i32, i32) {
    %c0_i32 = arith.constant 0 : i32
    %c0_i32_0 = arith.constant 0 : i32
    %c0_i32_1 = arith.constant 0 : i32
    return %c0_i32, %c0_i32_0 : i32, i32
  }
  func.func @transform_11(%arg0: i32) -> (i32, i32) {
    %c0_i32 = arith.constant 0 : i32
    %c0_i32_0 = arith.constant 0 : i32
    return %arg0, %c0_i32 : i32, i32
  }
}

</mosaic_0001>

<bundles_post_ra>
// kernel: tpu_custom_call.1
= control target key start
LH: loop header
LB: loop body
LE: loop exit
PB: predicated region body
PF: predicated region fallthrough
CT: control target
= control target key end

     0   :  { %s2067_s0 = inlined_call_operand.hbm [shape: f32[8,22], index: 0, kind: input, shape index: {}]   ;;  %s2068_s1 = inlined_call_operand.hbm [shape: bf16[22,1024], index: 1, kind: input, shape index: {}]   ;;  %s2069_s2 = inlined_call_operand.vmem [shape: f32[1,1024], index: 2, kind: input, shape index: {}]   ;;  %s2070_s3 = inlined_call_operand.hbm [shape: bf16[1024,128], index: 3, kind: input, shape index: {}]   ;;  %s2071_s4 = inlined_call_operand.vmem [shape: f32[1,128], index: 4, kind: input, shape index: {}]   ;;  %s2072_s5 = inlined_call_operand.hbm [shape: bf16[128,128], index: 5, kind: input, shape index: {}]   ;;  %s2073_s6 = inlined_call_operand.vmem [shape: f32[1,128], index: 6, kind: input, shape index: {}]   ;;  %s2074_s7 = inlined_call_operand.hbm [shape: bf16[128,128], index: 7, kind: input, shape index: {}]   ;;  %s2075_s8 = inlined_call_operand.vmem [shape: f32[1,128], index: 8, kind: input, shape index: {}]   ;;  %s2076_s9 = inlined_call_operand.vmem [shape: bf16[1,128], index: 9, kind: input, shape index: {}]   ;;  %s2077_s10 = inlined_call_operand.<no memory space> [shape: f32[1,1], index: 10, kind: input, shape index: {}]   ;;  %s2078_s11 = inlined_call_operand.vmem [shape: f32[8,1], index: 11, kind: output, shape index: {}]  }
   0x1   :  { %v16_v0 = vstv %s2077_s10 }
   0x2   :  { %17 = vst [vmem:[#allocation2] sm:$0x1] %v16_v0 }
   0x3   :  { %18 = vsyncpa [#allocation4], 0 }
   0x4   :  { %19 = vsyncpa [#allocation6], 0 }
   0x5   :  { %20 = vsyncpa [#allocation9], 0  ;;  %s1845_s19 = smov [#allocation5]   ;;  %s1729_s23 = scalar_lea.hbm %s2068_s1, 1536 }
   0x6   :  { %s36_s20 = sshll.u32 %s1845_s19, 4  ;;  %p1730_p0 = scmp.ne.s32.totalorder %s2068_s1, %s1729_s23  ;;  %s37_s20 = int_to_ptr.vmem [resolvable:$true] %s36_s20 }
   0x7   :  { %p1733_p1 = scmp.lt.u32.totalorder %s1729_s23, %s2068_s1 }
   0x9   :  { %p1735_p2 = pnand %p1733_p1, %p1730_p0 }
   0xb   :  { %1738 = shalt.err (!%p1735_p2)
}
   0xc   :  { %s1739_s10 = scalar_lea.vmem %s37_s20, 1536  ;;  %p1744_p4 = scmp.lt.s32.totalorder %s37_s20, %s37_s20 }
   0xd   :  { %p1740_p3 = scmp.ne.s32.totalorder %s37_s20, %s1739_s10  ;;  %p1745_p5 = scmp.lt.s32.totalorder %s1739_s10, %s1739_s10 }
   0xf   :  { %p1746_p6 = por %p1745_p5, %p1744_p4 }
  0x11   :  { %p1747_p7 = pnand %p1746_p6, %p1740_p3 }
  0x13   :  { %1750 = shalt.err (!%p1747_p7)
}
  0x14   :  { %s1846_s28 = smov 512   ;;  %s1847_s29 = smov 32  }
  0x15   :  { %42 = dma.hbm_to_vmem [thread:$0]  %s2068_s1, 1536, %s37_s20, [#allocation6], %s1846_s28, %s1846_s28, %s1847_s29  }
  0x16   :  { %s1848_s13 = smov [#allocation8]   ;;  %s1849_s15 = smov [#allocation3]  }
  0x17   :  { %s64_s14 = sshll.u32 %s1848_s13, 4  ;;  %s27_s16 = sshll.u32 %s1849_s15, 4  ;;  %s65_s14 = int_to_ptr.vmem [resolvable:$true] %s64_s14  ;;  %s28_s16 = int_to_ptr.vmem [resolvable:$true] %s27_s16 }
  0x18   :  { %s1751_s19 = scalar_lea.hbm %s2072_s5, 1024 }
  0x19   :  { %p1752_p8 = scmp.ne.s32.totalorder %s2072_s5, %s1751_s19  ;;  %p1755_p9 = scmp.lt.u32.totalorder %s1751_s19, %s2072_s5 }
  0x1b   :  { %p1757_p10 = pnand %p1755_p9, %p1752_p8 }
  0x1d   :  { %1760 = shalt.err (!%p1757_p10)
}
  0x1e   :  { %s1761_s1 = scalar_lea.vmem %s65_s14, 1024  ;;  %p1766_p12 = scmp.lt.s32.totalorder %s65_s14, %s65_s14 }
  0x1f   :  { %p1762_p11 = scmp.ne.s32.totalorder %s65_s14, %s1761_s1  ;;  %p1767_p13 = scmp.lt.s32.totalorder %s1761_s1, %s1761_s1 }
  0x21   :  { %p1768_p0 = por %p1767_p13, %p1766_p12 }
  0x23   :  { %p1769_p1 = pnand %p1768_p0, %p1762_p11 }
  0x25   :  { %1772 = shalt.err (!%p1769_p1)
}
  0x26   :  { %s1850_s20 = smov 64   ;;  %s1851_s25 = smov 4  }
  0x27   :  { %70 = dma.hbm_to_vmem [thread:$0]  %s2072_s5, 1024, %s65_s14, [#allocation9], %s1850_s20, %s1850_s20, %s1851_s25  }
  0x28   :  { %s1773_s29 = scalar_lea.hbm %s2067_s0, 128 }
  0x29   :  { %p1774_p2 = scmp.ne.s32.totalorder %s2067_s0, %s1773_s29  ;;  %p1777_p3 = scmp.lt.u32.totalorder %s1773_s29, %s2067_s0 }
  0x2b   :  { %p1779_p4 = pnand %p1777_p3, %p1774_p2 }
  0x2d   :  { %1782 = shalt.err (!%p1779_p4)
}
  0x2e   :  { %s1783_s17 = scalar_lea.vmem %s28_s16, 128  ;;  %p1788_p6 = scmp.lt.s32.totalorder %s28_s16, %s28_s16 }
  0x2f   :  { %p1784_p5 = scmp.ne.s32.totalorder %s28_s16, %s1783_s17  ;;  %p1789_p7 = scmp.lt.s32.totalorder %s1783_s17, %s1783_s17 }
  0x31   :  { %p1790_p8 = por %p1789_p7, %p1788_p6 }
  0x33   :  { %p1791_p9 = pnand %p1790_p8, %p1784_p5 }
  0x35   :  { %1794 = shalt.err (!%p1791_p9)
}
  0x36   :  { %30 = dma.hbm_to_vmem [thread:$0]  %s2067_s0, 128, %s28_s16, [#allocation4]  }
  0x37   :  { %s1852_s18 = smov [#allocation7]   ;;  %s1853_s21 = smov [#allocation10]  }
  0x38   :  { %s50_s19 = sshll.u32 %s1852_s18, 4  ;;  %s78_s22 = sshll.u32 %s1853_s21, 4  ;;  %s51_s19 = int_to_ptr.vmem [resolvable:$true] %s50_s19  ;;  %s79_s22 = int_to_ptr.vmem [resolvable:$true] %s78_s22 }
  0x39   :  { %s1795_s1 = scalar_lea.hbm %s2070_s3, 8192 }
  0x3a   :  { %p1796_p10 = scmp.ne.s32.totalorder %s2070_s3, %s1795_s1  ;;  %p1799_p11 = scmp.lt.u32.totalorder %s1795_s1, %s2070_s3 }
  0x3c   :  { %p1801_p12 = pnand %p1799_p11, %p1796_p10 }
  0x3e   :  { %1804 = shalt.err (!%p1801_p12)
}
  0x3f   :  { %s1805_s0 = scalar_lea.vmem %s51_s19, 8192  ;;  %p1810_p0 = scmp.lt.s32.totalorder %s51_s19, %s51_s19 }
  0x40   :  { %p1806_p13 = scmp.ne.s32.totalorder %s51_s19, %s1805_s0  ;;  %p1811_p1 = scmp.lt.s32.totalorder %s1805_s0, %s1805_s0 }
  0x42   :  { %p1812_p2 = por %p1811_p1, %p1810_p0 }
  0x44   :  { %p1813_p3 = pnand %p1812_p2, %p1806_p13 }
  0x46   :  { %1816 = shalt.err (!%p1813_p3)
}
  0x47   :  { %56 = dma.hbm_to_vmem [thread:$0]  %s2070_s3, 8192, %s51_s19, [#allocation6], %s1850_s20, %s1850_s20, %s1851_s25  }
  0x48   :  { %s1817_s13 = scalar_lea.hbm %s2074_s7, 1024 }
  0x49   :  { %p1818_p4 = scmp.ne.s32.totalorder %s2074_s7, %s1817_s13  ;;  %p1821_p5 = scmp.lt.u32.totalorder %s1817_s13, %s2074_s7 }
  0x4b   :  { %p1823_p6 = pnand %p1821_p5, %p1818_p4 }
  0x4d   :  { %1826 = shalt.err (!%p1823_p6)
}
  0x4e   :  { %s1827_s18 = scalar_lea.vmem %s79_s22, 1024  ;;  %p1832_p8 = scmp.lt.s32.totalorder %s79_s22, %s79_s22 }
  0x4f   :  { %p1828_p7 = scmp.ne.s32.totalorder %s79_s22, %s1827_s18  ;;  %p1833_p9 = scmp.lt.s32.totalorder %s1827_s18, %s1827_s18 }
  0x51   :  { %p1834_p10 = por %p1833_p9, %p1832_p8 }
  0x53   :  { %p1835_p11 = pnand %p1834_p10, %p1828_p7 }
  0x55   :  { %1838 = shalt.err (!%p1835_p11)
}
  0x56   :  { %84 = dma.hbm_to_vmem [thread:$0]  %s2074_s7, 1024, %s79_s22, [#allocation9], %s1850_s20, %s1850_s20, %s1851_s25  }
  0x57   :  { %1839 = dma.done.wait [#allocation4], 128  }
  0x58   :  { %1840 = vsyncadd [#allocation4], 4294967168 }
  0x59   :  { %1841 = dma.done.wait [#allocation6], 9728  }
  0x5a   :  { %1842 = vsyncadd [#allocation6], 4294957568 }
  0x5b   :  { %1843 = dma.done.wait [#allocation9], 2048  }
  0x5c   :  { %1844 = vsyncadd [#allocation9], 4294965248  ;;  %v1854_v1 = vmov 0   ;;  %v109_v2 = vld [vmem:[#allocation5] sm:$0xff]  ;;  %v110_v4 = vld [vmem:[#allocation5 + $0x8] sm:$0xff]  ;;  %vm227_vm0 = vcmask 1042432  }
  0x5d   :  { %284 = vmatprep.mubr.bf16.mxu0 %v1854_v1  ;;  %325 = vmatprep.mubr.bf16.mxu1 %v1854_v1  ;;  %v113_v3 = vld [vmem:[#allocation5 + $0x20] sm:$0xff]  ;;  %v114_v6 = vld [vmem:[#allocation5 + $0x28] sm:$0xff]  ;;  %v111_v14 = vld [vmem:[#allocation5 + $0x10] sm:$0xff]  ;;  %vm223_vm1 = vcmask 179200   ;;  %vm1856_vm2 = vmmov 0   ;;  %vm1366_vm3 = vcmask 7168  }
  0x5e   :  { %v1376_v5 = vcombine.high %v109_v2, %v113_v3  ;;  %v1375_v7 = vcombine.low %v109_v2, %v113_v3  ;;  %v117_v8 = vld [vmem:[#allocation5 + $0x40] sm:$0x77]  ;;  %v118_v9 = vld [vmem:[#allocation5 + $0x48] sm:$0x77]  ;;  %v1378_v10 = vcombine.high %v110_v4, %v114_v6  ;;  %v1377_v11 = vcombine.low %v110_v4, %v114_v6  ;;  %v115_v15 = vld [vmem:[#allocation5 + $0x30] sm:$0xff] }
  0x5f   :  { %v1384_v12 = vcombine.high %v117_v8, %v117_v8  ;;  %v1386_v13 = vcombine.high %v118_v9, %v118_v9  ;;  %v1383_v16 = vcombine.low %v117_v8, %v117_v8  ;;  %v1385_v17 = vcombine.low %v118_v9, %v118_v9  ;;  %v112_v18 = vld [vmem:[#allocation5 + $0x18] sm:$0xff]  ;;  %v119_v24 = vld [vmem:[#allocation5 + $0x50] sm:$0x77]  ;;  %v1649_v34 = vld [vmem:[#allocation7 + $0x40] sm:$0xff]  }
  0x60   :  { %252 = vmatprep.subr.bf16.mxu0 %v1376_v5  ;;  %v116_v19 = vld [vmem:[#allocation5 + $0x38] sm:$0xff]  ;;  %293 = vmatprep.subr.bf16.mxu1 %v1378_v10  ;;  %v1380_v23 = vcombine.high %v111_v14, %v115_v15  ;;  %v1379_v28 = vcombine.low %v111_v14, %v115_v15  ;;  %v1388_v30 = vcombine.high %v119_v24, %v119_v24  ;;  %v1650_v36 = vld [vmem:[#allocation7 + $0xc0] sm:$0xff]   ;;  %v1653_v40 = vld [vmem:[#allocation7 + $0x48] sm:$0xff]   ;;  %v123_v6 = vlaneseq }
  0x61   :  { %253 = vmatpush1.bf16.msra.mxu0 %v1375_v7  ;;  %v107_v20 = vld [vmem:[#allocation3] sm:$0xff]  ;;  %294 = vmatpush1.bf16.msra.mxu1 %v1377_v11  ;;  %v229_v21 = vsel %vm227_vm0, %v1383_v16, 0  ;;  %v235_v22 = vsel %vm227_vm0, %v1385_v17, 0  ;;  %v1382_v25 = vcombine.high %v112_v18, %v116_v19  ;;  %v1381_v29 = vcombine.low %v112_v18, %v116_v19  ;;  %v1651_v38 = vld [vmem:[#allocation7] sm:$0xff]   ;;  %v1654_v41 = vld [vmem:[#allocation7 + $0xc8] sm:$0xff]  }
  0x62   :  { %1391 = vmatprep.subr.msk.bf16.mxu0 %vm227_vm0, %v1384_v12  ;;  %1393 = vmatprep.subr.msk.bf16.mxu1 %vm227_vm0, %v1386_v13  ;;  %v108_v26 = vpack.c.bf16 %v107_v20, %v107_v20  ;;  %v120_v27 = vld [vmem:[#allocation5 + $0x58] sm:$0x77]  ;;  %v1387_v31 = vcombine.low %v119_v24, %v119_v24  ;;  %v1652_v39 = vld [vmem:[#allocation7 + $0x80] sm:$0xff]   ;;  %v1655_v42 = vld [vmem:[#allocation7 + $0x8] sm:$0xff]   ;;  %v2001_v7 = vshrl.u32 %v123_v6, 7 }
  0x63   :  { %v1390_v32 = vcombine.high %v120_v27, %v120_v27  ;;  %v1389_v33 = vcombine.low %v120_v27, %v120_v27  ;;  %v1656_v43 = vld [vmem:[#allocation7 + $0x88] sm:$0xff]   ;;  %v1657_v44 = vld [vmem:[#allocation7 + $0x50] sm:$0xff]   ;;  %v1661_v48 = vld [vmem:[#allocation7 + $0x58] sm:$0xff]  }
  0x64   :  { %v241_v35 = vsel %vm227_vm0, %v1387_v31, 0  ;;  %v1658_v45 = vld [vmem:[#allocation7 + $0xd0] sm:$0xff]   ;;  %v1662_v49 = vld [vmem:[#allocation7 + $0xd8] sm:$0xff]   ;;  %v1665_v52 = vld [vmem:[#allocation7 + $0x60] sm:$0xff]   ;;  %v125_v8 = vsub.s32 0, %v2001_v7  ;;  %v133_v10 = vsub.s32 2, %v2001_v7 }
  0x65   :  { %255 = vmatpush1.bf16.msra.mxu0 %v229_v21  ;;  %296 = vmatpush1.bf16.msra.mxu1 %v235_v22  ;;  %v247_v37 = vsel %vm227_vm0, %v1389_v33, 0  ;;  %v1659_v46 = vld [vmem:[#allocation7 + $0x10] sm:$0xff]   ;;  %v1663_v50 = vld [vmem:[#allocation7 + $0x18] sm:$0xff]   ;;  %v1666_v53 = vld [vmem:[#allocation7 + $0xe0] sm:$0xff]   ;;  %v129_v11 = vsub.s32 1, %v2001_v7  ;;  %v137_v12 = vsub.s32 3, %v2001_v7 }
  0x66   :  { %334 = vmatprep.subr.bf16.mxu0 %v1380_v23  ;;  %375 = vmatprep.subr.bf16.mxu1 %v1382_v25  ;;  %v1660_v47 = vld [vmem:[#allocation7 + $0x90] sm:$0xff]   ;;  %v1664_v51 = vld [vmem:[#allocation7 + $0x98] sm:$0xff]   ;;  %v1667_v54 = vld [vmem:[#allocation7 + $0x20] sm:$0xff]   ;;  %v145_v25 = vsub.s32 5, %v2001_v7 }
  0x67   :  { %v1668_v55 = vld [vmem:[#allocation7 + $0xa0] sm:$0xff]   ;;  %v1669_v56 = vld [vmem:[#allocation7 + $0x68] sm:$0xff]   ;;  %v1673_v60 = vld [vmem:[#allocation7 + $0x70] sm:$0xff]  }
  0x68   :  { %1392 = vmatmul.mubr.msk.bf16.vlgmr.msra.gmra.mrb[0].mxu0 %vm223_vm1, %v108_v26  ;;  %1394 = vmatmul.mubr.msk.bf16.vlgmr.msra.gmra.mrb[0].mxu1 %vm223_vm1, %v108_v26  ;;  %v1670_v57 = vld [vmem:[#allocation7 + $0xe8] sm:$0xff]   ;;  %v1674_v61 = vld [vmem:[#allocation7 + $0xf0] sm:$0xff]   ;;  %v1677_v0 = vld [vmem:[#allocation7 + $0x78] sm:$0xff]  }
  0x69   :  { %335 = vmatpush1.bf16.msra.mxu0 %v1379_v28  ;;  %376 = vmatpush1.bf16.msra.mxu1 %v1381_v29  ;;  %v1671_v58 = vld [vmem:[#allocation7 + $0x28] sm:$0xff]   ;;  %v1675_v62 = vld [vmem:[#allocation7 + $0x30] sm:$0xff]   ;;  %v1679_v2 = vld [vmem:[#allocation7 + $0x38] sm:$0xff]  }
  0x6a   :  { %1395 = vmatprep.subr.msk.bf16.mxu0 %vm227_vm0, %v1388_v30  ;;  %1397 = vmatprep.subr.msk.bf16.mxu1 %vm227_vm0, %v1390_v32  ;;  %v1672_v59 = vld [vmem:[#allocation7 + $0xa8] sm:$0xff]   ;;  %v1676_v63 = vld [vmem:[#allocation7 + $0xb0] sm:$0xff]   ;;  %v1680_v3 = vld [vmem:[#allocation7 + $0xb8] sm:$0xff]   ;;  %v153_v30 = vsub.s32 7, %v2001_v7 }
  0x6b   :  { %366 = vmatprep.mubr.bf16.mxu0 %v1854_v1  ;;  %407 = vmatprep.mubr.bf16.mxu1 %v1854_v1  ;;  %v1678_v1 = vld [vmem:[#allocation7 + $0xf8] sm:$0xff]   ;;  %v1681_v4 = vld [vmem:[#allocation7 + $0x140] sm:$0xff]  }
  0x6c   :  { %v1682_v5 = vld [vmem:[#allocation7 + $0x1c0] sm:$0xff]   ;;  %v2007_v9 = vld [vmem:[%s2069_s2] sm:$0xff] }
  0x6d   :  { %337 = vmatpush1.bf16.msra.mxu0 %v241_v35  ;;  %378 = vmatpush1.bf16.msra.mxu1 %v247_v37  ;;  %v126_v13 = vrot.slane %v2007_v9, %v125_v8  ;;  %v134_v14 = vrot.slane %v2007_v9, %v133_v10  ;;  %v130_v15 = vrot.slane %v2007_v9, %v129_v11  ;;  %v1693_v6 = vld [vmem:[#allocation7 + $0x158] sm:$0xff]  }
  0x6e   :  { %1483 = vmatprep.subr.bf16.mxu0 %v1649_v34  ;;  %1505 = vmatprep.subr.bf16.mxu1 %v1650_v36  ;;  %v138_v16 = vrot.slane %v2007_v9, %v137_v12  ;;  %v1694_v11 = vld [vmem:[#allocation7 + $0x1d8] sm:$0xff]  }
  0x6f   :  { %v1695_v12 = vld [vmem:[#allocation7 + $0x118] sm:$0xff]  }
  0x70   :  { %1396 = vmatmul.mubr.msk.bf16.vlgmr.msra.gmra.mrb[4].mxu0 %vm223_vm1, %v108_v26  ;;  %1398 = vmatmul.mubr.msk.bf16.vlgmr.msra.gmra.mrb[4].mxu1 %vm223_vm1, %v108_v26 }
  0x71   :  { %1484 = vmatpush3.bf16.msra.mxu0 %v1651_v38  ;;  %1506 = vmatpush3.bf16.msra.mxu1 %v1652_v39  ;;  %v146_v38 = vrot.slane %v2007_v9, %v145_v25 }
  0x72   :  { %1485 = vmatprep.subr.bf16.mxu0 %v1653_v40  ;;  %1507 = vmatprep.subr.bf16.mxu1 %v1654_v41  ;;  %v154_v40 = vrot.slane %v2007_v9, %v153_v30  ;;  %v1707_v30 = vld [vmem:[#allocation7 + $0x130] sm:$0xff]  }
  0x75   :  { %1486 = vmatpush3.bf16.msra.mxu0 %v1655_v42  ;;  %1508 = vmatpush3.bf16.msra.mxu1 %v1656_v43  ;;  %v1683_v42 = vld [vmem:[#allocation7 + $0x100] sm:$0xff]  }
  0x76   :  { %1487 = vmatprep.subr.bf16.mxu0 %v1657_v44  ;;  %1509 = vmatprep.subr.bf16.mxu1 %v1658_v45 }
  0x79   :  { %1488 = vmatpush3.bf16.msra.mxu0 %v1659_v46  ;;  %1510 = vmatpush3.bf16.msra.mxu1 %v1660_v47  ;;  %v1684_v46 = vld [vmem:[#allocation7 + $0x180] sm:$0xff]   ;;  %v1685_v47 = vld [vmem:[#allocation7 + $0x148] sm:$0xff]  }
  0x7a   :  { %1489 = vmatprep.subr.bf16.mxu0 %v1661_v48  ;;  %1511 = vmatprep.subr.bf16.mxu1 %v1662_v49 }
  0x7d   :  { %1490 = vmatpush3.bf16.msra.mxu0 %v1663_v50  ;;  %1512 = vmatpush3.bf16.msra.mxu1 %v1664_v51  ;;  %v1686_v51 = vld [vmem:[#allocation7 + $0x1c8] sm:$0xff]  }
  0x7e   :  { %1491 = vmatprep.subr.bf16.mxu0 %v1665_v52  ;;  %1513 = vmatprep.subr.bf16.mxu1 %v1666_v53 }
  0x81   :  { %1492 = vmatpush3.bf16.msra.mxu0 %v1667_v54  ;;  %1514 = vmatpush3.bf16.msra.mxu1 %v1668_v55 }
  0x82   :  { %1493 = vmatprep.subr.bf16.mxu0 %v1669_v56  ;;  %1515 = vmatprep.subr.bf16.mxu1 %v1670_v57 }
  0x85   :  { %1494 = vmatpush3.bf16.msra.mxu0 %v1671_v58  ;;  %1516 = vmatpush3.bf16.msra.mxu1 %v1672_v59  ;;  %v1687_v58 = vld [vmem:[#allocation7 + $0x108] sm:$0xff]  }
  0x86   :  { %1495 = vmatprep.subr.bf16.mxu0 %v1673_v60  ;;  %1517 = vmatprep.subr.bf16.mxu1 %v1674_v61  ;;  %v1688_v61 = vld [vmem:[#allocation7 + $0x188] sm:$0xff]  }
  0x89   :  { %1496 = vmatpush3.bf16.msra.mxu0 %v1675_v62  ;;  %1518 = vmatpush3.bf16.msra.mxu1 %v1676_v63  ;;  %v1689_v62 = vld [vmem:[#allocation7 + $0x150] sm:$0xff]  }
  0x8a   :  { %1497 = vmatprep.subr.bf16.mxu0 %v1677_v0  ;;  %1519 = vmatprep.subr.bf16.mxu1 %v1678_v1  ;;  %v1690_v0 = vld [vmem:[#allocation7 + $0x1d0] sm:$0xff]  }
  0x8d   :  { %1498 = vmatpush3.bf16.msra.mxu0 %v1679_v2  ;;  %1520 = vmatpush3.bf16.msra.mxu1 %v1680_v3  ;;  %v1691_v3 = vld [vmem:[#allocation7 + $0x110] sm:$0xff]  }
  0x8e   :  { %1527 = vmatprep.subr.bf16.mxu0 %v1681_v4  ;;  %1549 = vmatprep.subr.bf16.mxu1 %v1682_v5  ;;  %v1692_v5 = vld [vmem:[#allocation7 + $0x190] sm:$0xff]  }
 0x13b   :  { %v286_v17 = vpop.f32.mrb[0].mxu0  ;;  %v327_v19 = vpop.f32.mrb[0].mxu1 }
 0x13c   :  { %v287_v18 = vadd.f32 %v286_v17, %v126_v13  ;;  %v288_v20 = vpop.f32.mrb[1].mxu0  ;;  %v328_v21 = vadd.f32 %v327_v19, %v134_v14  ;;  %v329_v23 = vpop.f32.mrb[1].mxu1  ;;  %v1696_v13 = vld [vmem:[#allocation7 + $0x198] sm:$0xff]   ;;  %v1697_v14 = vld [vmem:[#allocation7 + $0x160] sm:$0xff]   ;;  %v149_v17 = vsub.s32 6, %v2001_v7 }
 0x13d   :  { %v289_v22 = vadd.f32 %v288_v20, %v130_v15  ;;  %v290_v24 = vpop.f32.mrb[2].mxu0  ;;  %v330_v27 = vadd.f32 %v329_v23, %v138_v16  ;;  %v331_v28 = vpop.f32.mrb[2].mxu1  ;;  %v141_v15 = vsub.s32 4, %v2001_v7  ;;  %v1698_v16 = vld [vmem:[#allocation7 + $0x1e0] sm:$0xff]   ;;  %v1702_v23 = vld [vmem:[#allocation7 + $0x1e8] sm:$0xff]  }
 0x13e   :  { %v416_v26 = vmul.f32 0.01, %v287_v18  ;;  %v291_v29 = vpop.f32.mrb[3].mxu0  ;;  %v418_v31 = vmul.f32 0.01, %v328_v21  ;;  %v332_v33 = vpop.f32.mrb[3].mxu1 }
 0x13f   :  { %v417_v32 = vmul.f32 0.01, %v289_v22  ;;  %v419_v35 = vmul.f32 0.01, %v330_v27  ;;  %v1700_v19 = vld [vmem:[#allocation7 + $0x1a0] sm:$0xff]   ;;  %v142_v20 = vrot.slane %v2007_v9, %v141_v15  ;;  %v1703_v24 = vld [vmem:[#allocation7 + $0x128] sm:$0xff]  }
 0x140   :  { %v424_v34 = vmax.f32 %v287_v18, %v416_v26  ;;  %v426_v36 = vmax.f32 %v328_v21, %v418_v31  ;;  %v1699_v18 = vld [vmem:[#allocation7 + $0x120] sm:$0xff]   ;;  %v1701_v21 = vld [vmem:[#allocation7 + $0x168] sm:$0xff]   ;;  %v1706_v29 = vld [vmem:[#allocation7 + $0x1f0] sm:$0xff]  }
 0x141   :  { %v425_v37 = vmax.f32 %v289_v22, %v417_v32  ;;  %v427_v39 = vmax.f32 %v330_v27, %v419_v35  ;;  %v150_v22 = vrot.slane %v2007_v9, %v149_v17  ;;  %v1704_v26 = vld [vmem:[#allocation7 + $0x1a8] sm:$0xff]   ;;  %v1705_v27 = vld [vmem:[#allocation7 + $0x170] sm:$0xff]   ;;  %v1709_v9 = vld [vmem:[#allocation7 + $0x178] sm:$0xff]  }
 0x142   :  { %v432_v44 = vpack.c.bf16 %v424_v34, %v424_v34  ;;  %v434_v50 = vpack.c.bf16 %v426_v36, %v426_v36  ;;  %v1708_v32 = vld [vmem:[#allocation7 + $0x1b0] sm:$0xff]   ;;  %v1710_v34 = vld [vmem:[#allocation7 + $0x1f8] sm:$0xff]  }
 0x143   :  { %v433_v41 = vpack.c.bf16 %v425_v37, %v425_v37  ;;  %v2022_v43 = vpop.f32.mrb[4].mxu0  ;;  %v435_v45 = vpack.c.bf16 %v427_v39, %v427_v39  ;;  %v2024_v49 = vpop.f32.mrb[4].mxu1  ;;  %v1711_v35 = vld [vmem:[#allocation7 + $0x138] sm:$0xff]  }
 0x144   :  { %v370_v48 = vpop.f32.mrb[5].mxu0  ;;  %v411_v54 = vpop.f32.mrb[5].mxu1  ;;  %v369_v25 = vadd.f32 %v2022_v43, %v142_v20  ;;  %v410_v28 = vadd.f32 %v2024_v49, %v150_v22  ;;  %v1712_v37 = vld [vmem:[#allocation7 + $0x1b8] sm:$0xff]   ;;  %v1714_v43 = vld [vmem:[#allocation8 + $0x8] sm:$0xff]  }
 0x145   :  { %991 = vmatprep.mubr.bf16.mxu0 %v433_v41  ;;  %v371_v52 = vadd.f32 %v370_v48, %v146_v38  ;;  %v372_v53 = vpop.f32.mrb[6].mxu0  ;;  %1031 = vmatprep.mubr.bf16.mxu1 %v435_v45  ;;  %v412_v56 = vadd.f32 %v411_v54, %v154_v40  ;;  %v413_v57 = vpop.f32.mrb[6].mxu1  ;;  %v1713_v41 = vld [vmem:[#allocation8] sm:$0xff]   ;;  %v1716_v45 = vld [vmem:[#allocation8 + $0x18] sm:$0xff]   ;;  %v1719_v48 = vld [vmem:[#allocation8 + $0x30] sm:$0xff]  }
 0x146   :  { %992 = vmatmul.mubr.bf16.vlgmr.msra.gmra.mrb[8].mxu0 %v432_v44  ;;  %v373_v55 = vpop.f32.mrb[7].mxu0  ;;  %1032 = vmatmul.mubr.bf16.vlgmr.msra.gmra.mrb[8].mxu1 %v434_v50  ;;  %v414_v60 = vpop.f32.mrb[7].mxu1  ;;  %v420_v31 = vmul.f32 0.01, %v369_v25  ;;  %v422_v33 = vmul.f32 0.01, %v410_v28 }
 0x147   :  { %1528 = vmatpush3.bf16.msra.mxu0 %v1683_v42  ;;  %v421_v59 = vmul.f32 0.01, %v371_v52  ;;  %1550 = vmatpush3.bf16.msra.mxu1 %v1684_v46  ;;  %v423_v63 = vmul.f32 0.01, %v412_v56  ;;  %v1855_v42 = vmov 0.0   ;;  %v1715_v44 = vld [vmem:[#allocation8 + $0x10] sm:$0xff]  }
 0x148   :  { %1529 = vmatprep.subr.bf16.mxu0 %v1685_v47  ;;  %1551 = vmatprep.subr.bf16.mxu1 %v1686_v51  ;;  %v428_v36 = vmax.f32 %v369_v25, %v420_v31  ;;  %v430_v38 = vmax.f32 %v410_v28, %v422_v33  ;;  %v1717_v46 = vld [vmem:[#allocation8 + $0x20] sm:$0xff]   ;;  %v1718_v47 = vld [vmem:[#allocation8 + $0x28] sm:$0xff]   ;;  %v1720_v49 = vld [vmem:[#allocation8 + $0x38] sm:$0xff]  }
 0x149   :  { %v429_v1 = vmax.f32 %v371_v52, %v421_v59  ;;  %v431_v2 = vmax.f32 %v412_v56, %v423_v63  ;;  %v1721_v50 = vld [vmem:[#allocation10] sm:$0xff]   ;;  %v1722_v51 = vld [vmem:[#allocation10 + $0x8] sm:$0xff]   ;;  %v1723_v52 = vld [vmem:[#allocation10 + $0x10] sm:$0xff]  }
 0x14a   :  { %v436_v39 = vpack.c.bf16 %v428_v36, %v428_v36  ;;  %v438_v40 = vpack.c.bf16 %v430_v38, %v430_v38  ;;  %v1724_v53 = vld [vmem:[#allocation10 + $0x18] sm:$0xff]   ;;  %v1725_v54 = vld [vmem:[#allocation10 + $0x20] sm:$0xff]   ;;  %v1726_v55 = vld [vmem:[#allocation10 + $0x28] sm:$0xff]  }
 0x14b   :  { %1530 = vmatpush3.bf16.msra.mxu0 %v1687_v58  ;;  %v437_v4 = vpack.c.bf16 %v429_v1, %v429_v1  ;;  %1552 = vmatpush3.bf16.msra.mxu1 %v1688_v61  ;;  %v439_v10 = vpack.c.bf16 %v431_v2, %v431_v2  ;;  %v1399_v58 = vld [vmem:[%s2071_s4] ss:$0 sm:$0xff] }
 0x14c   :  { %1531 = vmatprep.subr.bf16.mxu0 %v1689_v62  ;;  %1553 = vmatprep.subr.bf16.mxu1 %v1690_v0  ;;  %v1464_v25 = vld [vmem:[%s2073_s6] ss:$0 sm:$0xff] }
 0x14d   :  { %1071 = vmatprep.mubr.bf16.mxu0 %v437_v4  ;;  %1111 = vmatprep.mubr.bf16.mxu1 %v439_v10  ;;  %v1349_v33 = vld [vmem:[%s2076_s9] sm:$0x1] }
 0x14f   :  { %1532 = vmatpush3.bf16.msra.mxu0 %v1691_v3  ;;  %1554 = vmatpush3.bf16.msra.mxu1 %v1692_v5 }
 0x150   :  { %1533 = vmatprep.subr.bf16.mxu0 %v1693_v6  ;;  %1555 = vmatprep.subr.bf16.mxu1 %v1694_v11 }
 0x153   :  { %1534 = vmatpush3.bf16.msra.mxu0 %v1695_v12  ;;  %1556 = vmatpush3.bf16.msra.mxu1 %v1696_v13 }
 0x154   :  { %1535 = vmatprep.subr.bf16.mxu0 %v1697_v14  ;;  %1557 = vmatprep.subr.bf16.mxu1 %v1698_v16 }
 0x157   :  { %1536 = vmatpush3.bf16.msra.mxu0 %v1699_v18  ;;  %1558 = vmatpush3.bf16.msra.mxu1 %v1700_v19 }
 0x158   :  { %1537 = vmatprep.subr.bf16.mxu0 %v1701_v21  ;;  %1559 = vmatprep.subr.bf16.mxu1 %v1702_v23  ;;  %v1727_v23 = vld [vmem:[#allocation10 + $0x30] sm:$0xff]  }
 0x15b   :  { %1538 = vmatpush3.bf16.msra.mxu0 %v1703_v24  ;;  %1560 = vmatpush3.bf16.msra.mxu1 %v1704_v26  ;;  %v1728_v24 = vld [vmem:[#allocation10 + $0x38] sm:$0xff]  }
 0x15c   :  { %1539 = vmatprep.subr.bf16.mxu0 %v1705_v27  ;;  %1561 = vmatprep.subr.bf16.mxu1 %v1706_v29 }
 0x15f   :  { %1540 = vmatpush3.bf16.msra.mxu0 %v1707_v30  ;;  %1562 = vmatpush3.bf16.msra.mxu1 %v1708_v32 }
 0x160   :  { %1541 = vmatprep.subr.bf16.mxu0 %v1709_v9  ;;  %1563 = vmatprep.subr.bf16.mxu1 %v1710_v34  ;;  %v1473_v34 = vld [vmem:[%s2075_s8] ss:$0 sm:$0xff] }
 0x163   :  { %1542 = vmatpush3.bf16.msra.mxu0 %v1711_v35  ;;  %1564 = vmatpush3.bf16.msra.mxu1 %v1712_v37  ;;  %v1350_v35 = vunpack.c.l.bf16 %v1349_v33 }
 0x164   :  { %1589 = vmatprep.subr.bf16.mxu0 %v1855_v42  ;;  %1609 = vmatprep.subr.bf16.mxu1 %v1855_v42 }
 0x166   :  { %1072 = vmatmul.mubr.bf16.vlgmr.msra.gmra.mrb[12].mxu0 %v436_v39  ;;  %1112 = vmatmul.mubr.bf16.vlgmr.msra.gmra.mrb[12].mxu1 %v438_v40 }
 0x167   :  { %1590 = vmatpush3.bf16.msra.mxu0 %v1713_v41  ;;  %1605 = vmatprep.mubr.msk.bf16.mxu0 %vm1856_vm2, %v1855_v42 }
 0x168   :  { %1591 = vmatprep.subr.bf16.mxu0 %v1855_v42  ;;  %1625 = vmatprep.mubr.msk.bf16.mxu1 %vm1856_vm2, %v1855_v42 }
 0x169   :  { %1610 = vmatpush3.bf16.msra.mxu1 %v1721_v50 }
 0x16a   :  { %1611 = vmatprep.subr.bf16.mxu1 %v1855_v42 }
 0x16b   :  { %1592 = vmatpush3.bf16.msra.mxu0 %v1714_v43 }
 0x16c   :  { %1593 = vmatprep.subr.bf16.mxu0 %v1855_v42 }
 0x16d   :  { %1612 = vmatpush3.bf16.msra.mxu1 %v1722_v51 }
 0x16e   :  { %1613 = vmatprep.subr.bf16.mxu1 %v1855_v42 }
 0x16f   :  { %1594 = vmatpush3.bf16.msra.mxu0 %v1715_v44 }
 0x170   :  { %1595 = vmatprep.subr.bf16.mxu0 %v1855_v42 }
 0x171   :  { %1614 = vmatpush3.bf16.msra.mxu1 %v1723_v52 }
 0x172   :  { %1615 = vmatprep.subr.bf16.mxu1 %v1855_v42 }
 0x173   :  { %1596 = vmatpush3.bf16.msra.mxu0 %v1716_v45  ;;  %v1482_v45 = vld [vmem:[#allocation2] ss:$0 sm:$0xff] }
 0x174   :  { %1597 = vmatprep.subr.bf16.mxu0 %v1855_v42 }
 0x175   :  { %1616 = vmatpush3.bf16.msra.mxu1 %v1724_v53 }
 0x176   :  { %1617 = vmatprep.subr.bf16.mxu1 %v1855_v42 }
 0x177   :  { %1598 = vmatpush3.bf16.msra.mxu0 %v1717_v46 }
 0x178   :  { %1599 = vmatprep.subr.bf16.mxu0 %v1855_v42 }
 0x179   :  { %1618 = vmatpush3.bf16.msra.mxu1 %v1725_v54 }
 0x17a   :  { %1619 = vmatprep.subr.bf16.mxu1 %v1855_v42 }
 0x17b   :  { %1600 = vmatpush3.bf16.msra.mxu0 %v1718_v47 }
 0x17c   :  { %1601 = vmatprep.subr.bf16.mxu0 %v1855_v42 }
 0x17d   :  { %1620 = vmatpush3.bf16.msra.mxu1 %v1726_v55 }
 0x17e   :  { %1621 = vmatprep.subr.bf16.mxu1 %v1855_v42 }
 0x17f   :  { %1602 = vmatpush3.bf16.msra.mxu0 %v1719_v48 }
 0x180   :  { %1603 = vmatprep.subr.bf16.mxu0 %v1855_v42 }
 0x181   :  { %1622 = vmatpush3.bf16.msra.mxu1 %v1727_v23 }
 0x182   :  { %1623 = vmatprep.subr.bf16.mxu1 %v1855_v42  ;;  %v1354_v42 = vrot.slane %v1350_v35, %v125_v8 }
 0x183   :  { %1604 = vmatpush3.bf16.msra.mxu0 %v1720_v49 }
 0x185   :  { %1624 = vmatpush3.bf16.msra.mxu1 %v1728_v24 }
 0x219   :  { %v1499_v56 = vpop.f32.mrb[8].mxu0  ;;  %v1521_v57 = vpop.f32.mrb[8].mxu1 }
 0x21a   :  { %v1500_v59 = vpop.f32.mrb[9].mxu0  ;;  %v1522_v61 = vpop.f32.mrb[9].mxu1 }
 0x21b   :  { %v1501_v60 = vadd.f32 %v1500_v59, %v1499_v56  ;;  %v1502_v62 = vpop.f32.mrb[10].mxu0  ;;  %v1523_v63 = vadd.f32 %v1522_v61, %v1521_v57  ;;  %v1524_v0 = vpop.f32.mrb[10].mxu1 }
 0x21c   :  { %v1503_v1 = vpop.f32.mrb[11].mxu0  ;;  %v1525_v3 = vpop.f32.mrb[11].mxu1 }
 0x21d   :  { %v994_v2 = vadd.f32 %v1501_v60, %v1399_v58 }
 0x21f   :  { %v1034_v4 = vadd.f32 %v1523_v63, %v994_v2 }
 0x239   :  { %v1543_v5 = vpop.f32.mrb[12].mxu0  ;;  %v1565_v6 = vpop.f32.mrb[12].mxu1 }
 0x23a   :  { %v1544_v10 = vpop.f32.mrb[13].mxu0  ;;  %v1566_v12 = vpop.f32.mrb[13].mxu1 }
 0x23b   :  { %v1545_v11 = vadd.f32 %v1544_v10, %v1543_v5  ;;  %v1546_v13 = vpop.f32.mrb[14].mxu0  ;;  %v1567_v14 = vadd.f32 %v1566_v12, %v1565_v6  ;;  %v1568_v15 = vpop.f32.mrb[14].mxu1 }
 0x23c   :  { %v1547_v16 = vpop.f32.mrb[15].mxu0  ;;  %v1569_v18 = vpop.f32.mrb[15].mxu1 }
 0x23d   :  { %v1074_v17 = vadd.f32 %v1545_v11, %v1034_v4 }
 0x23f   :  { %v1114_v19 = vadd.f32 %v1567_v14, %v1074_v17 }
 0x241   :  { %v1119_v20 = vmul.f32 0.01, %v1114_v19 }
 0x243   :  { %v1120_v21 = vmax.f32 %v1114_v19, %v1119_v20 }
 0x245   :  { %v1121_v22 = vpack.c.bf16 %v1120_v21, %v1120_v21 }
 0x247   :  { %1606 = vmatmul.mubr.bf16.vlgmr.msra.gmra.mrb[16].mxu0 %v1121_v22 }
 0x31a   :  { %v1227_v26 = vpop.f32.mrb[16].mxu0 }
 0x31b   :  { %v1228_v27 = vadd.f32 %v1464_v25, %v1227_v26  ;;  %v1607_v28 = vpop.f32.mrb[17].mxu0 }
 0x31c   :  { %v1230_v29 = vpop.f32.mrb[18].mxu0 }
 0x31d   :  { %v1233_v30 = vmul.f32 0.01, %v1228_v27  ;;  %v1608_v31 = vpop.f32.mrb[19].mxu0 }
 0x31f   :  { %v1234_v32 = vmax.f32 %v1228_v27, %v1233_v30 }
 0x321   :  { %v1235_v9 = vpack.c.bf16 %v1234_v32, %v1234_v32 }
 0x323   :  { %1626 = vmatmul.mubr.bf16.vlgmr.msra.gmra.mrb[16].mxu1 %v1235_v9 }
 0x3f6   :  { %v1341_v36 = vpop.f32.mrb[16].mxu1 }
 0x3f7   :  { %v1342_v37 = vadd.f32 %v1473_v34, %v1341_v36  ;;  %v1627_v38 = vpop.f32.mrb[17].mxu1 }
 0x3f8   :  { %v1344_v39 = vpop.f32.mrb[18].mxu1 }
 0x3f9   :  { %v1347_v40 = vmul.f32 0.01, %v1342_v37  ;;  %v1628_v41 = vpop.f32.mrb[19].mxu1 }
 0x3fb   :  { %v1348_v43 = vmax.f32 %v1342_v37, %v1347_v40 }
 0x3fd   :  { %v1355_v44 = vmul.f32 %v1354_v42, %v1348_v43 }
 0x3ff   :  { %1356 = vadd.xlane.f32.xlu0 %v1355_v44 }
 0x48c   :  { %v1357_v46 = vpop.xlane.xlu0 %1356 }
 0x48d   :  { %v1365_v47 = vadd.f32 %v1482_v45, %v1357_v46 }
 0x48f   :  { %1367 = vst.msk [vmem:[%s2078_s11] sm:$0xff] %vm1366_vm3, %v1365_v47 }
 0x490   :  { %1372 = vsyncpa [#allocation4], 1 }
 0x491   :  { %1373 = vsyncpa [#allocation6], 1 }
 0x492   :  { %1374 = vsyncpa [#allocation9], 1 }

</bundles_post_ra>
